<compile_context>
chip_gen: v6e
topology: v6e:2x2x1
jax: 0.10.0
libtpu: 0.0.40
codegen_flags: <defaults>
</compile_context>

<pallas_src>
import math
import functools

import jax
import jax.numpy as jnp
from jax.experimental import pallas as pl
from jax.experimental.pallas import tpu as pltpu


CONFIG = dict(dim=32, num_head=2, head_dim=16, rp_dim=16)


# --------------------------------------------------------------------------- #
# Fused Pallas kernel: QKV proj -> softmax_kernel feature map -> non-causal
# linear attention -> combine heads -> output projection, in one grid step.
# --------------------------------------------------------------------------- #
def _fused_attention_kernel(x_ref, c_ref, o_ref, *,
                            B, S, H, D, R, dim, eps,
                            c_qkv, c_pbd, c_ones, c_wff, c_bff):
    f32 = jnp.float32
    HD, HR, BS = H * D, H * R, B * S

    x = x_ref[...]                                   # (BS, dim+2) = [mask | x | 1]
    mask = x[:, 0:1]                                 # (BS, 1)

    # ---- fused QKV projection; biases folded via the ones column ----------- #
    # wqkv_aug: row 0 = zeros (mask col), rows 1..dim = [wq*ext | wk*ext | wv],
    # row dim+1 = [bq*ext | bk*ext | bv].
    wqkv = c_ref[0:dim + 2, c_qkv:c_qkv + 3 * HD]    # (dim+2, 3HD)
    qkv = jnp.dot(x, wqkv, preferred_element_type=f32)       # (BS, 3HD)
    q = qkv[:, 0:HD]                                 # Q * head_dim**-0.25
    k = qkv[:, HD:2 * HD] * mask                     # (K * head_dim**-0.25) * mask
    v = qkv[:, 2 * HD:3 * HD] * mask                 # V * mask

    # ---- softmax_kernel feature map: TWO GEMMs over the stacked [q; k] slab - #
    qk = jnp.concatenate([q, k], axis=0)             # (2BS, HD)
    pbd = c_ref[0:HD, c_pbd:c_pbd + HR]              # (HD, HR) block-diag, c folded in
    onesbd = c_ref[0:HD, c_ones:c_ones + H]          # (HD, H)  block-diag, 0.5*c^2 folded
    qkd = jnp.dot(qk, pbd, preferred_element_type=f32)          # (2BS, HR) logits
    dqk = jnp.dot(qk * qk, onesbd, preferred_element_type=f32)  # (2BS, H)  diag terms

    # Global max over ALL key logits (softmax_kernel, is_query=False).
    kd = qkd[BS:, :]
    kmax = jnp.max(jnp.max(kd, axis=1, keepdims=True), axis=0, keepdims=True)   # (1, 1)
    kmax_b = jnp.broadcast_to(kmax.reshape(1, 1, 1), (B, S, 1))

    wff = c_ref[0:HD, c_wff:c_wff + dim]             # (HD, dim)
    # Start the output accumulator at the ff bias (broadcasts on first add).
    o = c_ref[0:1, c_bff:c_bff + dim]                # (1, dim)

    # ---- per-head linear attention, batched over B via einsum -------------- #
    # ratio = R**-0.5 is dropped: it cancels exactly in the final division.
    for h in range(H):
        lg = qkd[:, h * R:(h + 1) * R].reshape(2 * B, S, R)   # q batches then k batches
        dd = dqk[:, h:h + 1].reshape(2 * B, S, 1)
        qmax = jnp.max(lg[0:B], axis=-1, keepdims=True)       # per-row max (is_query=True)
        shift = jnp.concatenate([qmax, kmax_b], axis=0)       # (2B, S, 1)
        p = jnp.exp(lg - dd - shift) + eps                    # ONE exp per head
        qp = p[0:B]                                           # (B, S, R)
        kp = p[B:2 * B]                                       # (B, S, R)

        vh = v[:, h * D:(h + 1) * D].reshape(B, S, D)         # (B, S, D)
        ksum = jnp.sum(kp, axis=1, keepdims=True)             # (B, 1, R)
        denom = jnp.sum(qp * ksum, axis=-1, keepdims=True)    # (B, S, 1)
        ctx = jnp.einsum('bsr,bsd->brd', kp, vh,
                         preferred_element_type=f32)          # (B, R, D)
        num = jnp.einsum('bsr,brd->bsd', qp, ctx,
                         preferred_element_type=f32)          # (B, S, D)
        out_h = num * pl.reciprocal(denom, approx=False)      # exact (1e-4 tolerance)

        # combine_heads + output projection, accumulated per head:
        # no (BS, HD) scratch, no 16-lane masked column stores.
        o = o + jnp.dot(out_h.reshape(BS, D), wff[h * D:(h + 1) * D, :],
                        preferred_element_type=f32)

    o_ref[...] = o                                            # single full-width store


# --------------------------------------------------------------------------- #
# Wrapper: full Attention.forward as one pallas_call with 2 input DMAs
# --------------------------------------------------------------------------- #
def attention_forward(X, mask, params, config):
    B, S, dim = X.shape
    H, D, R = config["num_head"], config["head_dim"], config["rp_dim"]
    HD, HR, BS = H * D, H * R, B * S

    ext = 1.0 / math.sqrt(math.sqrt(D))   # external Q/K scaling (exact power of two here)
    c = D ** -0.25                        # softmax_kernel data_normalizer
    eps = 1e-4

    # --- activations slab: [mask | x | 1] ----------------------------------- #
    x2 = X.reshape(BS, dim).astype(jnp.float32)
    m2 = mask.astype(jnp.float32).reshape(BS, 1)
    ones = jnp.ones((BS, 1), jnp.float32)
    x_slab = jnp.concatenate([m2, x2, ones], axis=1)                      # (BS, dim+2)

    # --- constants slab (one lane-padded DMA for every weight) -------------- #
    wqkv = jnp.concatenate([params["wq"] * ext, params["wk"] * ext, params["wv"]], axis=1)
    bqkv = jnp.concatenate([params["bq"] * ext, params["bk"] * ext, params["bv"]])[None, :]
    zrow = jnp.zeros((1, 3 * HD), jnp.float32)
    wqkv_aug = jnp.concatenate([zrow, wqkv, bqkv], axis=0)                # (dim+2, 3HD)

    eyeH = jnp.eye(H, dtype=jnp.float32)
    pbd = jnp.kron(eyeH, jnp.transpose(params["proj"]) * c)               # (HD, HR)
    onesbd = jnp.kron(eyeH, jnp.full((D, 1), 0.5 * c * c, jnp.float32))   # (HD, H)
    wff = params["wff"].astype(jnp.float32)                               # (HD, dim)
    bff = params["bff"].reshape(1, dim).astype(jnp.float32)

    LB = 128 * math.ceil(max(3 * HD, HR, H, dim) / 128)   # 128-lane block per operand
    c_qkv, c_pbd, c_ones, c_wff, c_bff = 0, LB, 2 * LB, 3 * LB, 4 * LB
    n_rows = max(dim + 2, HD)
    consts = jnp.zeros((n_rows, 5 * LB), jnp.float32)
    consts = consts.at[0:dim + 2, c_qkv:c_qkv + 3 * HD].set(wqkv_aug)
    consts = consts.at[0:HD, c_pbd:c_pbd + HR].set(pbd)
    consts = consts.at[0:HD, c_ones:c_ones + H].set(onesbd)
    consts = consts.at[0:HD, c_wff:c_wff + dim].set(wff)
    consts = consts.at[0:1, c_bff:c_bff + dim].set(bff)

    kernel = functools.partial(
        _fused_attention_kernel,
        B=B, S=S, H=H, D=D, R=R, dim=dim, eps=eps,
        c_qkv=c_qkv, c_pbd=c_pbd, c_ones=c_ones, c_wff=c_wff, c_bff=c_bff,
    )

    out = pl.pallas_call(
        kernel,
        out_shape=jax.ShapeDtypeStruct((BS, dim), jnp.float32),
        grid=(1,),
        in_specs=[
            pl.BlockSpec((BS, dim + 2), lambda i: (0, 0)),      # activations slab
            pl.BlockSpec((n_rows, 5 * LB), lambda i: (0, 0)),   # all constants, one DMA
        ],
        out_specs=pl.BlockSpec((BS, dim), lambda i: (0, 0)),
        compiler_params=pltpu.CompilerParams(dimension_semantics=("arbitrary",)),
    )(x_slab, consts)

    return out.reshape(B, S, dim)


# --------------------------------------------------------------------------- #
# Pure-JAX reference (mirrors the PyTorch module, for correctness check)
# --------------------------------------------------------------------------- #
def attention_reference(X, mask, params, config):
    H, D, R = config["num_head"], config["head_dim"], config["rp_dim"]
    B, S, _ = X.shape

    def lin(x, w, b):
        return x @ w + b

    def split(y):
        return y.reshape(B, S, H, D).transpose(0, 2, 1, 3)

    Q = split(lin(X, params["wq"], params["bq"]))
    K = split(lin(X, params["wk"], params["bk"]))
    V = split(lin(X, params["wv"], params["bv"]))

    s = 1.0 / math.sqrt(math.sqrt(D))
    m = mask[:, None, :, None]
    q_in, k_in, v_in = Q * s, K * s * m, V * m

    c = D ** -0.25
    ratio = R ** -0.5
    eps = 1e-4
    P = params["proj"]

    qd = jnp.einsum("bhsd,rd->bhsr", q_in * c, P)
    kd = jnp.einsum("bhsd,rd->bhsr", k_in * c, P)
    dq = jnp.sum(q_in ** 2, -1, keepdims=True) * 0.5 * c * c
    dk = jnp.sum(k_in ** 2, -1, keepdims=True) * 0.5 * c * c
    qp = ratio * (jnp.exp(qd - dq - jnp.max(qd, -1, keepdims=True)) + eps)
    kp = ratio * (jnp.exp(kd - dk - jnp.max(kd)) + eps)

    ksum = kp.sum(axis=-2)
    dinv = 1.0 / jnp.einsum("bhsr,bhr->bhs", qp, ksum)
    ctx = jnp.einsum("bhsr,bhsd->bhrd", kp, v_in)
    attn = jnp.einsum("bhrd,bhsr,bhs->bhsd", ctx, qp, dinv)
    attn = attn.transpose(0, 2, 1, 3).reshape(B, S, H * D)
    return lin(attn, params["wff"], params["bff"])


# --------------------------------------------------------------------------- #
# Deterministic parameter init
# --------------------------------------------------------------------------- #
def gaussian_orthogonal_matrix(key, nb_rows, nb_cols):
    """gaussian_orthogonal_random_matrix with scaling=0 (performer_pytorch)."""
    k1, k2 = jax.random.split(key)
    nb_full_blocks = nb_rows // nb_cols
    keys = jax.random.split(k1, nb_full_blocks + 1)
    blocks = []
    for i in range(nb_full_blocks):
        g = jax.random.normal(keys[i], (nb_cols, nb_cols), jnp.float32)
        q, _ = jnp.linalg.qr(g)
        blocks.append(q.T)
    rem = nb_rows - nb_full_blocks * nb_cols
    if rem > 0:
        g = jax.random.normal(keys[-1], (nb_cols, nb_cols), jnp.float32)
        q, _ = jnp.linalg.qr(g)
        blocks.append(q.T[:rem])
    mat = jnp.concatenate(blocks, axis=0)
    multiplier = jnp.linalg.norm(
        jax.random.normal(k2, (nb_rows, nb_cols), jnp.float32), axis=1
    )
    return multiplier[:, None] * mat


def init_params(key, config):
    dim, H, D, R = config["dim"], config["num_head"], config["head_dim"], config["rp_dim"]
    ks = jax.random.split(key, 9)

    def lin(kw, kb, fan_in, fan_out):
        w = jax.random.normal(kw, (fan_in, fan_out), jnp.float32) / math.sqrt(fan_in)
        b = jax.random.normal(kb, (fan_out,), jnp.float32) * 0.02
        return w, b

    wq, bq = lin(ks[0], ks[1], dim, H * D)
    wk, bk = lin(ks[2], ks[3], dim, H * D)
    wv, bv = lin(ks[4], ks[5], dim, H * D)
    wff, bff = lin(ks[6], ks[7], H * D, dim)
    proj = gaussian_orthogonal_matrix(ks[8], R, D)
    return dict(wq=wq, bq=bq, wk=wk, bk=bk, wv=wv, bv=bv, wff=wff, bff=bff, proj=proj)


# --------------------------------------------------------------------------- #
if __name__ == "__main__":
    cfg = CONFIG
    B, S = 2, 16

    key = jax.random.PRNGKey(0)
    kx, km, kp = jax.random.split(key, 3)

    X = jax.random.normal(kx, (B, S, cfg["dim"]), jnp.float32)
    mask = (jax.random.uniform(km, (B, S)) > 0.25).astype(jnp.float32)
    mask = mask.at[:, 0].set(1.0)  # ensure at least one valid token per sequence

    params = init_params(kp, cfg)

    out = attention_forward(X, mask, params, cfg)
    out = jax.block_until_ready(out)

    ref = attention_reference(X, mask, params, cfg)
    assert out.shape == (B, S, cfg["dim"])
    max_err = float(jnp.max(jnp.abs(out - ref)))
    assert jnp.allclose(out, ref, rtol=1e-4, atol=1e-4), f"max abs err {max_err}"

    print("KERNEL_OK")
</pallas_src>

<mosaic_0001>
module attributes {stable_mosaic.version = 11 : i64} {
  func.func @_fused_attention_kernel(%arg0: i32, %arg1: memref<32x34xf32, #tpu.memory_space<vmem>>, %arg2: memref<34x640xf32, #tpu.memory_space<vmem>>, %arg3: memref<32x32xf32, #tpu.memory_space<vmem>>) attributes {dimension_semantics = [#tpu.dimension_semantics<arbitrary>], iteration_bounds = array<i64: 1>, scalar_prefetch = 0 : i64, scratch_operands = 0 : i64, tpu.core_type = #tpu.core_type<tc>, window_params = [{pipeline_mode = #tpu.pipeline_mode<synchronous>, transform_indices = @transform_0, window_bounds = array<i64: 32, 34>}, {pipeline_mode = #tpu.pipeline_mode<synchronous>, transform_indices = @transform_1, window_bounds = array<i64: 34, 640>}, {pipeline_mode = #tpu.pipeline_mode<synchronous>, transform_indices = @transform_2, window_bounds = array<i64: 32, 32>}]} {
    %c0 = arith.constant 0 : index
    %c0_0 = arith.constant 0 : index
    %0 = vector.load %arg1[%c0, %c0_0] : memref<32x34xf32, #tpu.memory_space<vmem>>, vector<32x34xf32>
    %1 = vector.extract_strided_slice %0 {offsets = [0, 0], sizes = [32, 1], strides = [1, 1]} : vector<32x34xf32> to vector<32x1xf32>
    %c0_1 = arith.constant 0 : index
    %c0_2 = arith.constant 0 : index
    %2 = vector.load %arg2[%c0_1, %c0_2] : memref<34x640xf32, #tpu.memory_space<vmem>>, vector<34x96xf32>
    %cst = arith.constant dense<0.000000e+00> : vector<32x96xf32>
    %3 = tpu.matmul %0, %2, %cst {dimension_numbers = #tpu.dot_dimension_numbers<[1], [0], [0], [1], [0, 0, 1, 1], [], []>} : vector<32x34xf32>, vector<34x96xf32>, vector<32x96xf32> -> vector<32x96xf32>
    %4 = vector.extract_strided_slice %3 {offsets = [0, 0], sizes = [32, 32], strides = [1, 1]} : vector<32x96xf32> to vector<32x32xf32>
    %5 = vector.extract_strided_slice %3 {offsets = [0, 32], sizes = [32, 32], strides = [1, 1]} : vector<32x96xf32> to vector<32x32xf32>
    %6 = vector.broadcast %1 : vector<32x1xf32> to vector<32x32xf32>
    %7 = arith.mulf %5, %6 : vector<32x32xf32>
    %8 = vector.extract_strided_slice %3 {offsets = [0, 64], sizes = [32, 32], strides = [1, 1]} : vector<32x96xf32> to vector<32x32xf32>
    %9 = vector.broadcast %1 : vector<32x1xf32> to vector<32x32xf32>
    %10 = arith.mulf %8, %9 : vector<32x32xf32>
    %11 = tpu.concatenate %4, %7 in 0 : vector<32x32xf32>, vector<32x32xf32> -> vector<64x32xf32>
    %c0_3 = arith.constant 0 : index
    %c128 = arith.constant 128 : index
    %12 = vector.load %arg2[%c0_3, %c128] : memref<34x640xf32, #tpu.memory_space<vmem>>, vector<32x32xf32>
    %c0_4 = arith.constant 0 : index
    %c256 = arith.constant 256 : index
    %13 = vector.load %arg2[%c0_4, %c256] : memref<34x640xf32, #tpu.memory_space<vmem>>, vector<32x2xf32>
    %cst_5 = arith.constant dense<0.000000e+00> : vector<64x32xf32>
    %14 = tpu.matmul %11, %12, %cst_5 {dimension_numbers = #tpu.dot_dimension_numbers<[1], [0], [0], [1], [0, 0, 1, 1], [], []>} : vector<64x32xf32>, vector<32x32xf32>, vector<64x32xf32> -> vector<64x32xf32>
    %15 = arith.mulf %11, %11 : vector<64x32xf32>
    %cst_6 = arith.constant dense<0.000000e+00> : vector<64x2xf32>
    %16 = tpu.matmul %15, %13, %cst_6 {dimension_numbers = #tpu.dot_dimension_numbers<[1], [0], [0], [1], [0, 0, 1, 1], [], []>} : vector<64x32xf32>, vector<32x2xf32>, vector<64x2xf32> -> vector<64x2xf32>
    %17 = vector.extract_strided_slice %14 {offsets = [32, 0], sizes = [32, 32], strides = [1, 1]} : vector<64x32xf32> to vector<32x32xf32>
    %cst_7 = arith.constant dense<0xFF800000> : vector<32xf32>
    %18 = vector.multi_reduction <maximumf>, %17, %cst_7 [1] : vector<32x32xf32> to vector<32xf32>
    %19 = vector.shape_cast %18 : vector<32xf32> to vector<32x1xf32>
    %cst_8 = arith.constant dense<0xFF800000> : vector<1xf32>
    %20 = vector.multi_reduction <maximumf>, %19, %cst_8 [0] : vector<32x1xf32> to vector<1xf32>
    %21 = vector.shape_cast %20 : vector<1xf32> to vector<1x1xf32>
    %22 = vector.shape_cast %21 : vector<1x1xf32> to vector<1x1x1xf32>
    %23 = vector.shape_cast %22 : vector<1x1x1xf32> to vector<1x1x1xf32>
    %24 = vector.broadcast %23 : vector<1x1x1xf32> to vector<2x16x1xf32>
    %c0_9 = arith.constant 0 : index
    %c384 = arith.constant 384 : index
    %25 = vector.load %arg2[%c0_9, %c384] : memref<34x640xf32, #tpu.memory_space<vmem>>, vector<32x32xf32>
    %c0_10 = arith.constant 0 : index
    %c512 = arith.constant 512 : index
    %26 = vector.load %arg2[%c0_10, %c512] : memref<34x640xf32, #tpu.memory_space<vmem>>, vector<1x32xf32>
    %27 = vector.extract_strided_slice %14 {offsets = [0, 0], sizes = [64, 16], strides = [1, 1]} : vector<64x32xf32> to vector<64x16xf32>
    %28 = vector.shape_cast %27 : vector<64x16xf32> to vector<4x16x16xf32>
    %29 = vector.extract_strided_slice %16 {offsets = [0, 0], sizes = [64, 1], strides = [1, 1]} : vector<64x2xf32> to vector<64x1xf32>
    %30 = vector.shape_cast %29 : vector<64x1xf32> to vector<4x16x1xf32>
    %31 = vector.extract_strided_slice %28 {offsets = [0, 0, 0], sizes = [2, 16, 16], strides = [1, 1, 1]} : vector<4x16x16xf32> to vector<2x16x16xf32>
    %cst_11 = arith.constant dense<0xFF800000> : vector<2x16xf32>
    %32 = vector.multi_reduction <maximumf>, %31, %cst_11 [2] : vector<2x16x16xf32> to vector<2x16xf32>
    %33 = vector.shape_cast %32 : vector<2x16xf32> to vector<2x16x1xf32>
    %34 = tpu.concatenate %33, %24 in 0 : vector<2x16x1xf32>, vector<2x16x1xf32> -> vector<4x16x1xf32>
    %35 = vector.broadcast %30 : vector<4x16x1xf32> to vector<4x16x16xf32>
    %36 = arith.subf %28, %35 : vector<4x16x16xf32>
    %37 = vector.broadcast %34 : vector<4x16x1xf32> to vector<4x16x16xf32>
    %38 = arith.subf %36, %37 : vector<4x16x16xf32>
    %39 = math.exp %38 : vector<4x16x16xf32>
    %cst_12 = arith.constant 9.99999974E-5 : f32
    %40 = vector.broadcast %cst_12 : f32 to vector<4x16x16xf32>
    %41 = arith.addf %39, %40 : vector<4x16x16xf32>
    %42 = vector.extract_strided_slice %41 {offsets = [0, 0, 0], sizes = [2, 16, 16], strides = [1, 1, 1]} : vector<4x16x16xf32> to vector<2x16x16xf32>
    %43 = vector.extract_strided_slice %41 {offsets = [2, 0, 0], sizes = [2, 16, 16], strides = [1, 1, 1]} : vector<4x16x16xf32> to vector<2x16x16xf32>
    %44 = vector.extract_strided_slice %10 {offsets = [0, 0], sizes = [32, 16], strides = [1, 1]} : vector<32x32xf32> to vector<32x16xf32>
    %45 = vector.shape_cast %44 : vector<32x16xf32> to vector<2x16x16xf32>
    %cst_13 = arith.constant dense<0.000000e+00> : vector<2x16xf32>
    %46 = vector.multi_reduction <add>, %43, %cst_13 [1] : vector<2x16x16xf32> to vector<2x16xf32>
    %47 = vector.shape_cast %46 : vector<2x16xf32> to vector<2x1x16xf32>
    %48 = vector.broadcast %47 : vector<2x1x16xf32> to vector<2x16x16xf32>
    %49 = arith.mulf %42, %48 : vector<2x16x16xf32>
    %cst_14 = arith.constant dense<0.000000e+00> : vector<2x16xf32>
    %50 = vector.multi_reduction <add>, %49, %cst_14 [2] : vector<2x16x16xf32> to vector<2x16xf32>
    %51 = vector.shape_cast %50 : vector<2x16xf32> to vector<2x16x1xf32>
    "tpu.trace_start"() <{level = 10 : i32, message = "bsr,bsd->brd"}> : () -> ()
    %cst_15 = arith.constant dense<0.000000e+00> : vector<2x16x16xf32>
    %52 = tpu.matmul %43, %45, %cst_15 {dimension_numbers = #tpu.dot_dimension_numbers<[1], [1], [2], [2], [0, 0, 0, 2, 1, 2], [0], [0]>} : vector<2x16x16xf32>, vector<2x16x16xf32>, vector<2x16x16xf32> -> vector<2x16x16xf32>
    "tpu.trace_stop"() : () -> ()
    "tpu.trace_start"() <{level = 10 : i32, message = "bsr,brd->bsd"}> : () -> ()
    %cst_16 = arith.constant dense<0.000000e+00> : vector<2x16x16xf32>
    %53 = tpu.matmul %42, %52, %cst_16 {dimension_numbers = #tpu.dot_dimension_numbers<[2], [1], [1], [2], [0, 0, 0, 1, 1, 2], [0], [0]>} : vector<2x16x16xf32>, vector<2x16x16xf32>, vector<2x16x16xf32> -> vector<2x16x16xf32>
    "tpu.trace_stop"() : () -> ()
    %54 = tpu.reciprocal %51 : vector<2x16x1xf32> -> vector<2x16x1xf32>
    %55 = vector.broadcast %54 : vector<2x16x1xf32> to vector<2x16x16xf32>
    %56 = arith.mulf %53, %55 : vector<2x16x16xf32>
    %57 = vector.shape_cast %56 : vector<2x16x16xf32> to vector<32x16xf32>
    %58 = vector.extract_strided_slice %25 {offsets = [0, 0], sizes = [16, 32], strides = [1, 1]} : vector<32x32xf32> to vector<16x32xf32>
    %cst_17 = arith.constant dense<0.000000e+00> : vector<32x32xf32>
    %59 = tpu.matmul %57, %58, %cst_17 {dimension_numbers = #tpu.dot_dimension_numbers<[1], [0], [0], [1], [0, 0, 1, 1], [], []>} : vector<32x16xf32>, vector<16x32xf32>, vector<32x32xf32> -> vector<32x32xf32>
    %60 = vector.broadcast %26 : vector<1x32xf32> to vector<32x32xf32>
    %61 = arith.addf %60, %59 : vector<32x32xf32>
    %62 = vector.extract_strided_slice %14 {offsets = [0, 16], sizes = [64, 16], strides = [1, 1]} : vector<64x32xf32> to vector<64x16xf32>
    %63 = vector.shape_cast %62 : vector<64x16xf32> to vector<4x16x16xf32>
    %64 = vector.extract_strided_slice %16 {offsets = [0, 1], sizes = [64, 1], strides = [1, 1]} : vector<64x2xf32> to vector<64x1xf32>
    %65 = vector.shape_cast %64 : vector<64x1xf32> to vector<4x16x1xf32>
    %66 = vector.extract_strided_slice %63 {offsets = [0, 0, 0], sizes = [2, 16, 16], strides = [1, 1, 1]} : vector<4x16x16xf32> to vector<2x16x16xf32>
    %cst_18 = arith.constant dense<0xFF800000> : vector<2x16xf32>
    %67 = vector.multi_reduction <maximumf>, %66, %cst_18 [2] : vector<2x16x16xf32> to vector<2x16xf32>
    %68 = vector.shape_cast %67 : vector<2x16xf32> to vector<2x16x1xf32>
    %69 = tpu.concatenate %68, %24 in 0 : vector<2x16x1xf32>, vector<2x16x1xf32> -> vector<4x16x1xf32>
    %70 = vector.broadcast %65 : vector<4x16x1xf32> to vector<4x16x16xf32>
    %71 = arith.subf %63, %70 : vector<4x16x16xf32>
    %72 = vector.broadcast %69 : vector<4x16x1xf32> to vector<4x16x16xf32>
    %73 = arith.subf %71, %72 : vector<4x16x16xf32>
    %74 = math.exp %73 : vector<4x16x16xf32>
    %cst_19 = arith.constant 9.99999974E-5 : f32
    %75 = vector.broadcast %cst_19 : f32 to vector<4x16x16xf32>
    %76 = arith.addf %74, %75 : vector<4x16x16xf32>
    %77 = vector.extract_strided_slice %76 {offsets = [0, 0, 0], sizes = [2, 16, 16], strides = [1, 1, 1]} : vector<4x16x16xf32> to vector<2x16x16xf32>
    %78 = vector.extract_strided_slice %76 {offsets = [2, 0, 0], sizes = [2, 16, 16], strides = [1, 1, 1]} : vector<4x16x16xf32> to vector<2x16x16xf32>
    %79 = vector.extract_strided_slice %10 {offsets = [0, 16], sizes = [32, 16], strides = [1, 1]} : vector<32x32xf32> to vector<32x16xf32>
    %80 = vector.shape_cast %79 : vector<32x16xf32> to vector<2x16x16xf32>
    %cst_20 = arith.constant dense<0.000000e+00> : vector<2x16xf32>
    %81 = vector.multi_reduction <add>, %78, %cst_20 [1] : vector<2x16x16xf32> to vector<2x16xf32>
    %82 = vector.shape_cast %81 : vector<2x16xf32> to vector<2x1x16xf32>
    %83 = vector.broadcast %82 : vector<2x1x16xf32> to vector<2x16x16xf32>
    %84 = arith.mulf %77, %83 : vector<2x16x16xf32>
    %cst_21 = arith.constant dense<0.000000e+00> : vector<2x16xf32>
    %85 = vector.multi_reduction <add>, %84, %cst_21 [2] : vector<2x16x16xf32> to vector<2x16xf32>
    %86 = vector.shape_cast %85 : vector<2x16xf32> to vector<2x16x1xf32>
    "tpu.trace_start"() <{level = 10 : i32, message = "bsr,bsd->brd"}> : () -> ()
    %cst_22 = arith.constant dense<0.000000e+00> : vector<2x16x16xf32>
    %87 = tpu.matmul %78, %80, %cst_22 {dimension_numbers = #tpu.dot_dimension_numbers<[1], [1], [2], [2], [0, 0, 0, 2, 1, 2], [0], [0]>} : vector<2x16x16xf32>, vector<2x16x16xf32>, vector<2x16x16xf32> -> vector<2x16x16xf32>
    "tpu.trace_stop"() : () -> ()
    "tpu.trace_start"() <{level = 10 : i32, message = "bsr,brd->bsd"}> : () -> ()
    %cst_23 = arith.constant dense<0.000000e+00> : vector<2x16x16xf32>
    %88 = tpu.matmul %77, %87, %cst_23 {dimension_numbers = #tpu.dot_dimension_numbers<[2], [1], [1], [2], [0, 0, 0, 1, 1, 2], [0], [0]>} : vector<2x16x16xf32>, vector<2x16x16xf32>, vector<2x16x16xf32> -> vector<2x16x16xf32>
    "tpu.trace_stop"() : () -> ()
    %89 = tpu.reciprocal %86 : vector<2x16x1xf32> -> vector<2x16x1xf32>
    %90 = vector.broadcast %89 : vector<2x16x1xf32> to vector<2x16x16xf32>
    %91 = arith.mulf %88, %90 : vector<2x16x16xf32>
    %92 = vector.shape_cast %91 : vector<2x16x16xf32> to vector<32x16xf32>
    %93 = vector.extract_strided_slice %25 {offsets = [16, 0], sizes = [16, 32], strides = [1, 1]} : vector<32x32xf32> to vector<16x32xf32>
    %cst_24 = arith.constant dense<0.000000e+00> : vector<32x32xf32>
    %94 = tpu.matmul %92, %93, %cst_24 {dimension_numbers = #tpu.dot_dimension_numbers<[1], [0], [0], [1], [0, 0, 1, 1], [], []>} : vector<32x16xf32>, vector<16x32xf32>, vector<32x32xf32> -> vector<32x32xf32>
    %95 = arith.addf %61, %94 : vector<32x32xf32>
    %c0_25 = arith.constant 0 : index
    %c0_26 = arith.constant 0 : index
    %96 = vector.load %arg3[%c0_25, %c0_26] : memref<32x32xf32, #tpu.memory_space<vmem>>, vector<32x32xf32>
    tpu.vector_store %arg3[%c0_25, %c0_26], %95 {strides = array<i32>} : memref<32x32xf32, #tpu.memory_space<vmem>>, vector<32x32xf32>,
    return
  }
  func.func @transform_0(%arg0: i32) -> (i32, i32) {
    %c0_i32 = arith.constant 0 : i32
    %c0_i32_0 = arith.constant 0 : i32
    %c0_i32_1 = arith.constant 0 : i32
    return %c0_i32, %c0_i32_0 : i32, i32
  }
  func.func @transform_1(%arg0: i32) -> (i32, i32) {
    %c0_i32 = arith.constant 0 : i32
    %c0_i32_0 = arith.constant 0 : i32
    %c0_i32_1 = arith.constant 0 : i32
    return %c0_i32, %c0_i32_0 : i32, i32
  }
  func.func @transform_2(%arg0: i32) -> (i32, i32) {
    %c0_i32 = arith.constant 0 : i32
    %c0_i32_0 = arith.constant 0 : i32
    %c0_i32_1 = arith.constant 0 : i32
    return %c0_i32, %c0_i32_0 : i32, i32
  }
}

</mosaic_0001>

<bundles_post_ra>
// kernel: tpu_custom_call.1
= control target key start
LH: loop header
LB: loop body
LE: loop exit
PB: predicated region body
PF: predicated region fallthrough
CT: control target
= control target key end

     0   :  { %7 = vsyncpa [#allocation3], 0  ;;  %s2509_s0 = inlined_call_operand.hbm [shape: f32[32,34], index: 0, kind: input, shape index: {}]   ;;  %s2510_s1 = inlined_call_operand.hbm [shape: f32[34,640], index: 1, kind: input, shape index: {}]   ;;  %s2511_s2 = inlined_call_operand.hbm [shape: f32[32,32], index: 2, kind: output, shape index: {}]  }
   0x1   :  { %8 = vsyncpa [#allocation6], 0 }
   0x2   :  { %9 = vsyncpa [#allocation4], 0  ;;  %s2249_s9 = smov [#allocation2]  }
   0x3   :  { %s15_s10 = sshll.u32 %s2249_s9, 4  ;;  %s16_s10 = int_to_ptr.vmem [resolvable:$true] %s15_s10 }
   0x4   :  { %s2191_s11 = scalar_lea.vmem %s16_s10, 512  ;;  %p2196_p1 = scmp.lt.s32.totalorder %s16_s10, %s16_s10 }
   0x5   :  { %p2192_p0 = scmp.ne.s32.totalorder %s16_s10, %s2191_s11  ;;  %p2197_p2 = scmp.lt.s32.totalorder %s2191_s11, %s2191_s11 }
   0x7   :  { %p2198_p3 = por %p2197_p2, %p2196_p1 }
   0x9   :  { %p2199_p4 = pnand %p2198_p3, %p2192_p0 }
   0xb   :  { %2202 = shalt.err (!%p2199_p4)
}
   0xc   :  { %s2250_s12 = smov 128   ;;  %s2251_s13 = smov 8  }
   0xd   :  { %21 = dma.hbm_to_vmem [thread:$0]  %s2509_s0, 512, %s16_s10, [#allocation3], %s2250_s12, %s2250_s12, %s2251_s13  }
   0xe   :  { %s2252_s16 = smov [#allocation5]  }
   0xf   :  { %s27_s17 = sshll.u32 %s2252_s16, 4  ;;  %s28_s17 = int_to_ptr.vmem [resolvable:$true] %s27_s17 }
  0x10   :  { %s2211_s18 = scalar_lea.vmem %s28_s17, 3200  ;;  %p2216_p6 = scmp.lt.s32.totalorder %s28_s17, %s28_s17 }
  0x11   :  { %p2212_p5 = scmp.ne.s32.totalorder %s28_s17, %s2211_s18  ;;  %p2217_p7 = scmp.lt.s32.totalorder %s2211_s18, %s2211_s18 }
  0x13   :  { %p2218_p8 = por %p2217_p7, %p2216_p6 }
  0x15   :  { %p2219_p9 = pnand %p2218_p8, %p2212_p5 }
  0x17   :  { %2222 = shalt.err (!%p2219_p9)
}
  0x18   :  { %s2253_s19 = smov 640   ;;  %s2254_s20 = smov 40  }
  0x19   :  { %33 = dma.hbm_to_vmem [thread:$0]  %s2510_s1, 3200, %s28_s17, [#allocation6], %s2253_s19, %s2253_s19, %s2254_s20  }
  0x1a   :  { %2243 = dma.done.wait [#allocation3], 512  }
  0x1b   :  { %2244 = vsyncadd [#allocation3], 4294966784 }
  0x1c   :  { %2245 = dma.done.wait [#allocation6], 3200  }
  0x1d   :  { %2246 = vsyncadd [#allocation6], 4294964096  ;;  %v2255_v0 = vmov 0   ;;  %vm62_vm0 = vcmask 1041408   ;;  %vm49_vm1 = vcmask 277504   ;;  %v47_v2 = vld [vmem:[#allocation5 + $0x78] sm:$0xff] }
  0x1e   :  { %2123 = vset.pattern.permute.xlu0 %v2255_v0  ;;  %2124 = vset.pattern.permute.xlu1 %v2255_v0  ;;  %v48_v1 = vld [vmem:[#allocation5 + $0xa0] sm:$0x3]  ;;  %v46_v4 = vld [vmem:[#allocation5 + $0x50] sm:$0xff]  ;;  %v45_v7 = vld [vmem:[#allocation5 + $0x28] sm:$0xff]  ;;  %vm195_vm2 = vcmask 261120   ;;  %s2256_s0 = smov 96  }
  0x1f   :  { %1977 = vmatprep.subr.msk.mxu0 %vm62_vm0, %v48_v1  ;;  %v40_v3 = vld [vmem:[#allocation2] sm:$0xff]  ;;  %v42_v5 = vld [vmem:[#allocation2 + $0x10] sm:$0xff]  ;;  %v41_v9 = vld [vmem:[#allocation2 + $0x8] sm:$0xff]  ;;  %s2257_s1 = smov 64   ;;  %v2258_v61 = vmov 1   ;;  %vm484_vm3 = vcmask 130048  }
  0x20   :  { %1978 = vmatpush3.msk.msra.mxu0 %vm62_vm0, %v48_v1  ;;  %1987 = vmatprep.mubr.msk.f32.mxu0 %vm49_vm1, %v40_v3  ;;  %v190_v6 = vld [vmem:[#allocation5 + $0x80] sm:$0xff]  ;;  %v189_v10 = vld [vmem:[#allocation5 + $0x58] sm:$0xff]  ;;  %v194_v12 = vld [vmem:[#allocation5 + $0x88] sm:$0xff]  ;;  %s2259_s23 = smov 112   ;;  %vm1145_vm4 = vcmask 261248   ;;  %s2260_s24 = smov 48  }
  0x21   :  { %1979 = vmatprep.subr.mxu0 %v47_v2  ;;  %152 = vperm.xlu0 %2123, %v40_v3   ;;  %v44_v8 = vld [vmem:[#allocation5] sm:$0xff]  ;;  %v43_v11 = vld [vmem:[#allocation2 + $0x18] sm:$0xff]  ;;  %v188_v13 = vld [vmem:[#allocation5 + $0x30] sm:$0xff]  ;;  %s2261_s25 = smov [#allocation7]  }
  0x22   :  { %1980 = vmatpush3.msra.mxu0 %v47_v2  ;;  %160 = vperm.xlu1 %2124, %v42_v5   ;;  %v193_v14 = vld [vmem:[#allocation5 + $0x60] sm:$0xff]  ;;  %v187_v15 = vld [vmem:[#allocation5 + $0x8] sm:$0xff]  ;;  %v192_v16 = vld [vmem:[#allocation5 + $0x38] sm:$0xff]  ;;  %s1842_s26 = sshll.u32 %s2261_s25, 4  ;;  %s1843_s26 = int_to_ptr.vmem [resolvable:$true] %s1842_s26 }
  0x23   :  { %1981 = vmatprep.subr.mxu0 %v46_v4  ;;  %1993 = vmatprep.subr.mxu1 %v190_v6  ;;  %v191_v17 = vld [vmem:[#allocation5 + $0x10] sm:$0xff]  ;;  %s2223_s27 = scalar_lea.vmem %s1843_s26, 512  ;;  %p2228_p11 = scmp.lt.s32.totalorder %s1843_s26, %s1843_s26 }
  0x24   :  { %1982 = vmatpush3.msra.mxu0 %v46_v4  ;;  %1994 = vmatpush3.msra.mxu1 %v190_v6  ;;  %p2224_p10 = scmp.ne.s32.totalorder %s1843_s26, %s2223_s27  ;;  %p2229_p12 = scmp.lt.s32.totalorder %s2223_s27, %s2223_s27 }
  0x25   :  { %1983 = vmatprep.subr.mxu0 %v45_v7  ;;  %156 = vperm.xlu0 %2123, %v41_v9  }
  0x26   :  { %1984 = vmatpush3.msra.mxu0 %v45_v7  ;;  %164 = vperm.xlu1 %2124, %v43_v11   ;;  %p2230_p13 = por %p2229_p12, %p2228_p11 }
  0x27   :  { %1985 = vmatprep.subr.mxu0 %v44_v8  ;;  %1995 = vmatprep.subr.mxu1 %v189_v10 }
  0x28   :  { %1986 = vmatpush3.msra.mxu0 %v44_v8  ;;  %1996 = vmatpush3.msra.mxu1 %v189_v10  ;;  %p2231_p0 = pnand %p2230_p13, %p2224_p10 }
  0x29   :  { %1988 = vmatmul.mubr.msk.f32.vlgmr.msra.gmra.mxu0 %vm49_vm1, %v41_v9  ;;  %2013 = vmatprep.subr.mxu0 %v194_v12 }
  0x2a   :  { %1990 = vmatprep.mubr.msk.f32.mxu0 %vm49_vm1, %v42_v5  ;;  %2014 = vmatpush3.msra.mxu0 %v194_v12 }
  0x2b   :  { %1997 = vmatprep.subr.mxu1 %v188_v13  ;;  %2015 = vmatprep.subr.mxu0 %v193_v14 }
  0x2c   :  { %1998 = vmatpush3.msra.mxu1 %v188_v13  ;;  %2016 = vmatpush3.msra.mxu0 %v193_v14 }
  0x2d   :  { %1991 = vmatmul.mubr.msk.f32.gmra.mxu0 %vm49_vm1, %v43_v11  ;;  %1999 = vmatprep.subr.mxu1 %v187_v15 }
  0x2e   :  { %2017 = vmatprep.subr.mxu0 %v192_v16  ;;  %2000 = vmatpush3.msra.mxu1 %v187_v15 }
  0x2f   :  { %2018 = vmatpush3.msra.mxu0 %v192_v16 }
  0x30   :  { %2019 = vmatprep.subr.mxu0 %v191_v17 }
  0x31   :  { %2020 = vmatpush3.msra.mxu0 %v191_v17 }
  0x9c   :  { %v153_v18 = vpop.permute.xlu0 %152 }
  0x9d   :  { %v161_v19 = vpop.permute.xlu1 %160 }
  0xa0   :  { %v157_v20 = vpop.permute.xlu0 %156 }
  0xa1   :  { %v165_v24 = vpop.permute.xlu1 %164 }
  0xe9   :  { %v1989_v21 = vpop.f32.mrf.mxu0 }
  0xea   :  { %v2292_v22 = vmul.f32 %v1989_v21, %v157_v20  ;;  %v322_v27 = vmul.f32 %v1989_v21, %v1989_v21 }
  0xeb   :  { %v132_v23 = vpop.f32.mrf.mxu0 }
  0xec   :  { %v2294_v25 = vmul.f32 %v153_v18, %v132_v23  ;;  %v321_v26 = vmul.f32 %v132_v23, %v132_v23  ;;  %177 = vrot.lane.b32.xlu1 %v2292_v22, %s2256_s0  ;;  %2001 = vmatprep.mubr.msk.f32.mxu1 %vm195_vm2, %v132_v23 }
  0xed   :  { %v1992_v28 = vpop.f32.mrf.mxu0  ;;  %2002 = vmatmul.mubr.msk.f32.vlgmr.msra.gmra.mxu1 %vm195_vm2, %v1989_v21 }
  0xee   :  { %v2299_v29 = vmul.f32 %v1992_v28, %v165_v24  ;;  %2021 = vmatprep.mubr.msk.f32.mxu0 %vm195_vm2, %v321_v26  ;;  %175 = vrot.lane.b32.xlu0 %v2294_v25, %s2256_s0  ;;  %v324_v33 = vmul.f32 %v1992_v28, %v1992_v28 }
  0xef   :  { %v142_v30 = vpop.f32.mrf.mxu0  ;;  %2022 = vmatmul.mubr.msk.f32.vlgmr.msra.gmra.mxu0 %vm195_vm2, %v322_v27 }
  0xf0   :  { %v2304_v31 = vmul.f32 %v161_v19, %v142_v30  ;;  %v323_v32 = vmul.f32 %v142_v30, %v142_v30  ;;  %181 = vrot.lane.b32.xlu1 %v2299_v29, %s2256_s0  ;;  %2004 = vmatprep.mubr.msk.f32.mxu1 %vm195_vm2, %v142_v30 }
  0xf1   :  { %2005 = vmatmul.mubr.msk.f32.gmra.mxu1 %vm195_vm2, %v1992_v28 }
  0xf2   :  { %2024 = vmatprep.mubr.msk.f32.mxu0 %vm195_vm2, %v323_v32  ;;  %179 = vrot.lane.b32.xlu0 %v2304_v31, %s2256_s0 }
  0xf3   :  { %2025 = vmatmul.mubr.msk.f32.gmra.mxu0 %vm195_vm2, %v324_v33 }
 0x15e   :  { %v178_v34 = vpop.permute.xlu1 %177 }
 0x15f   :  { %v326_v37 = vmul.f32 %v178_v34, %v178_v34 }
 0x160   :  { %v176_v35 = vpop.permute.xlu0 %175 }
 0x161   :  { %v325_v36 = vmul.f32 %v176_v35, %v176_v35  ;;  %2007 = vmatprep.mubr.msk.f32.mxu1 %vm195_vm2, %v176_v35 }
 0x162   :  { %2008 = vmatmul.mubr.msk.f32.gmra.mxu1 %vm195_vm2, %v178_v34  ;;  %v182_v38 = vpop.permute.xlu1 %181 }
 0x163   :  { %2027 = vmatprep.mubr.msk.f32.mxu0 %vm195_vm2, %v325_v36  ;;  %v328_v41 = vmul.f32 %v182_v38, %v182_v38 }
 0x164   :  { %2028 = vmatmul.mubr.msk.f32.gmra.mxu0 %vm195_vm2, %v326_v37  ;;  %v180_v39 = vpop.permute.xlu0 %179 }
 0x165   :  { %v327_v40 = vmul.f32 %v180_v39, %v180_v39  ;;  %2010 = vmatprep.mubr.msk.f32.mxu1 %vm195_vm2, %v180_v39 }
 0x166   :  { %2011 = vmatmul.mubr.msk.f32.gmra.mxu1 %vm195_vm2, %v182_v38 }
 0x167   :  { %2030 = vmatprep.mubr.msk.f32.mxu0 %vm195_vm2, %v327_v40 }
 0x168   :  { %2031 = vmatmul.mubr.msk.f32.gmra.mxu0 %vm195_vm2, %v328_v41 }
 0x1ad   :  { %v2320_v42 = vpop.f32.mrf.mxu1 }
 0x1af   :  { %v2322_v43 = vpop.f32.mrf.mxu1  ;;  %v2328_v46 = vpop.f32.mrf.mxu0 }
 0x1b1   :  { %v2324_v44 = vpop.f32.mrf.mxu1  ;;  %v2338_v51 = vpop.f32.mrf.mxu0 }
 0x1b3   :  { %v2326_v45 = vpop.f32.mrf.mxu1  ;;  %v2346_v55 = vpop.f32.mrf.mxu0 }
 0x1b5   :  { %v2350_v57 = vpop.f32.mrf.mxu0 }
 0x222   :  { %v2330_v47 = vpop.f32.mrf.mxu1 }
 0x223   :  { %v461_v48 = vsel %vm195_vm2, %v2330_v47, -inf }
 0x224   :  { %462 = vmax.xlane.f32.xlu1 %v461_v48  ;;  %v2334_v49 = vpop.f32.mrf.mxu1  ;;  %v2029_v58 = vpop.f32.mrf.mxu0 }
 0x225   :  { %v458_v50 = vsel %vm195_vm2, %v2334_v49, -inf }
 0x226   :  { %459 = vmax.xlane.f32.xlu0 %v458_v50  ;;  %v2340_v52 = vpop.f32.mrf.mxu1  ;;  %v439_v59 = vpop.f32.mrf.mxu0 }
 0x227   :  { %v467_v56 = vsel %vm195_vm2, %v2340_v52, -inf }
 0x228   :  { %v2342_v53 = vpop.f32.mrf.mxu1  ;;  %v2352_v60 = vpop.f32.mrf.mxu0 }
 0x229   :  { %v464_v54 = vsel %vm195_vm2, %v2342_v53, -inf }
 0x22a   :  { %465 = vmax.xlane.f32.xlu0 %v464_v54  ;;  %v449_v12 = vpop.f32.mrf.mxu0 }
 0x22e   :  { %468 = vmax.xlane.f32.xlu0 %v467_v56 }
 0x235   :  { %519 = vperm.xlu1 %2124, %v439_v59  }
 0x244   :  { %524 = vperm.xlu0 %2123, %v2029_v58  }
 0x248   :  { %534 = vperm.xlu0 %2123, %v2352_v60  }
 0x24c   :  { %668 = vrot.lane.b32.xlu0 %v2294_v25, %s2257_s1 }
 0x24d   :  { %2125 = vset.pattern.permute.xlu0 %v2258_v61 }
 0x250   :  { %787 = vrot.lane.b32.xlu0 %v2304_v31, %s2257_s1 }
 0x254   :  { %1175 = vperm.xlu0 %2125, %v439_v59  }
 0x2ad   :  { %v463_v1 = vpop.xlane.xlu1 %462 }
 0x2af   :  { %v460_v62 = vpop.xlane.xlu0 %459 }
 0x2b0   :  { %v470_v3 = vmax.f32 %v460_v62, %v463_v1 }
 0x2b1   :  { %v520_v14 = vpop.permute.xlu1 %519 }
 0x2b2   :  { %v541_v16 = vsub.f32 %v2334_v49, %v520_v14 }
 0x2b3   :  { %v466_v63 = vpop.xlane.xlu0 %465 }
 0x2b7   :  { %v469_v2 = vpop.xlane.xlu0 %468 }
 0x2b8   :  { %v471_v4 = vmax.f32 %v466_v63, %v469_v2 }
 0x2ba   :  { %v472_v5 = vmax.f32 %v470_v3, %v471_v4 }
 0x2bc   :  { %v473_v6 = vrot.slane %v472_v5, 4 }
 0x2be   :  { %v474_v7 = vmax.f32 %v472_v5, %v473_v6  ;;  %v485_v6 = vsel %vm484_vm3, %v2322_v43, -inf }
 0x2bf   :  { %v525_v13 = vpop.permute.xlu0 %524 }
 0x2c0   :  { %v475_v8 = vrot.slane %v474_v7, 2  ;;  %v542_v17 = vsub.f32 %v2330_v47, %v525_v13 }
 0x2c2   :  { %v476_v9 = vmax.f32 %v474_v7, %v475_v8  ;;  %v494_v8 = vsel %vm484_vm3, %v2324_v44, -inf }
 0x2c3   :  { %v535_v15 = vpop.permute.xlu0 %534 }
 0x2c4   :  { %v477_v10 = vrot.slane %v476_v9, 1  ;;  %v544_v18 = vsub.f32 %v2340_v52, %v535_v15 }
 0x2c6   :  { %v478_v11 = vmax.f32 %v476_v9, %v477_v10  ;;  %v491_v9 = vsel %vm484_vm3, %v2326_v45, -inf }
 0x2c7   :  { %v669_v33 = vpop.permute.xlu0 %668 }
 0x2c8   :  { %567 = vperm.xlu1 %2124, %v478_v11  }
 0x2cb   :  { %v788_v37 = vpop.permute.xlu0 %787 }
 0x2cc   :  { %529 = vperm.xlu1 %2124, %v449_v12  }
 0x2cf   :  { %v1176_v3 = vpop.permute.xlu0 %1175 }
 0x2d0   :  { %670 = vrot.lane.b32.xlu1 %v2292_v22, %s2257_s1  ;;  %v1194_v4 = vsub.f32 %v2334_v49, %v1176_v3 }
 0x2d1   :  { %2126 = vset.pattern.permute.xlu1 %v2258_v61 }
 0x2d4   :  { %789 = vrot.lane.b32.xlu1 %v2299_v29, %s2257_s1 }
 0x2d8   :  { %1179 = vperm.xlu1 %2126, %v2029_v58  }
 0x343   :  { %v2364_v19 = vpop.permute.xlu1 %567 }
 0x344   :  { %v574_v20 = vsub.f32 %v541_v16, %v2364_v19  ;;  %v575_v21 = vsub.f32 %v542_v17, %v2364_v19  ;;  %v577_v23 = vsub.f32 %v544_v18, %v2364_v19  ;;  %v1222_v5 = vsub.f32 %v1194_v4, %v2364_v19 }
 0x346   :  { %v586_v24 = vmul.f32 1.442695, %v574_v20  ;;  %v588_v26 = vmul.f32 1.442695, %v575_v21  ;;  %v592_v27 = vmul.f32 1.442695, %v577_v23 }
 0x347   :  { %v530_v28 = vpop.permute.xlu1 %529  ;;  %v1234_v7 = vmul.f32 1.442695, %v1222_v5 }
 0x348   :  { %v543_v30 = vsub.f32 %v2342_v53, %v530_v28  ;;  %2135 = vpow2.f32 %v586_v24 }
 0x349   :  { %2137 = vpow2.f32 %v588_v26 }
 0x34a   :  { %v576_v32 = vsub.f32 %v543_v30, %v2364_v19  ;;  %2139 = vpow2.f32 %v592_v27 }
 0x34b   :  { %v671_v34 = vpop.permute.xlu1 %670 }
 0x34c   :  { %v590_v35 = vmul.f32 1.442695, %v576_v32  ;;  %2033 = vmatprep.subr.mxu0 %v671_v34 }
 0x34d   :  { %2034 = vmatpush3.msra.mxu0 %v671_v34 }
 0x34e   :  { %2141 = vpow2.f32 %v590_v35  ;;  %2035 = vmatprep.subr.mxu0 %v669_v33 }
 0x34f   :  { %v790_v36 = vpop.permute.xlu1 %789  ;;  %2036 = vmatpush3.msra.mxu0 %v669_v33  ;;  %2143 = vpow2.f32 %v1234_v7 }
 0x350   :  { %2040 = vmatprep.subr.mxu1 %v790_v36 }
 0x351   :  { %2041 = vmatpush3.msra.mxu1 %v790_v36 }
 0x352   :  { %2042 = vmatprep.subr.mxu1 %v788_v37 }
 0x353   :  { %2043 = vmatpush3.msra.mxu1 %v788_v37  ;;  %v1180_v11 = vpop.permute.xlu1 %1179 }
 0x354   :  { %v1195_v27 = vsub.f32 %v2330_v47, %v1180_v11 }
 0x355   :  { %v2136_v38 = vpop.eup %2135 }
 0x356   :  { %v2138_v39 = vpop.eup %2137  ;;  %v598_v40 = vadd.f32 0.0001, %v2136_v38  ;;  %v1223_v28 = vsub.f32 %v1195_v27, %v2364_v19 }
 0x357   :  { %v2140_v41 = vpop.eup %2139  ;;  %v599_v48 = vadd.f32 0.0001, %v2138_v39 }
 0x358   :  { %636 = vxpose.xlu1.b32.start [1/2] (short) (narrow) %v598_v40, 16  ;;  %v602_v50 = vsel %vm484_vm3, %v598_v40, 0.0  ;;  %v601_v58 = vadd.f32 0.0001, %v2140_v41  ;;  %v1236_v32 = vmul.f32 1.442695, %v1223_v28 }
 0x359   :  { %v603_v54 = vsel %vm484_vm3, %v599_v48, 0.0  ;;  %v1146_v41 = vsel %vm1145_vm4, %v2322_v43, -inf }
 0x35a   :  { %v2373_v56 = vadd.f32 %v603_v54, %v602_v50  ;;  %v612_v1 = vsel %vm484_vm3, %v601_v58, 0.0 }
 0x35b   :  { %v2142_v59 = vpop.eup %2141 }
 0x35c   :  { %637 = vxpose.xlu1.b32.end [2/2] (short) (narrow) %v599_v48, 16  ;;  %v600_v62 = vadd.f32 0.0001, %v2142_v59  ;;  %v2144_v49 = vpop.eup %2143  ;;  %v1149_v48 = vsel %vm1145_vm4, %v2320_v42, -inf  ;;  %v605_v59 = vrot.slane %v2373_v56, 4 }
 0x35d   :  { %v2392_v10 = vadd.f32 0.0001, %v2144_v49 }
 0x35e   :  { %755 = vxpose.xlu0.b32.start [1/2] (short) (narrow) %v600_v62, 16  ;;  %v611_v63 = vsel %vm484_vm3, %v600_v62, 0.0  ;;  %v606_v4 = vadd.f32 %v605_v59, %v2373_v56  ;;  %v1152_v59 = vsel %vm1145_vm4, %v2326_v45, -inf }
 0x35f   :  { %v2377_v2 = vadd.f32 %v612_v1, %v611_v63 }
 0x362   :  { %756 = vxpose.xlu0.b32.end [2/2] (short) (narrow) %v601_v58, 16 }
 0x37a   :  { %1183 = vperm.xlu1 %2126, %v449_v12  }
 0x37e   :  { %2128 = vset.pattern.permute.xlu1 %v2255_v0 }
 0x38b   :  { %1187 = vperm.xlu0 %2125, %v2352_v60   ;;  %v488_v60 = vsel %vm484_vm3, %v2320_v42, -inf }
 0x38f   :  { %2127 = vset.pattern.permute.xlu0 %v2255_v0 }
 0x39e   :  { %486 = vmax.xlane.f32.xlu1 %v485_v6  ;;  %v607_v6 = vrot.slane %v606_v4, 2 }
 0x3a2   :  { %495 = vmax.xlane.f32.xlu1 %v494_v8  ;;  %v608_v8 = vadd.f32 %v607_v6, %v606_v4 }
 0x3a4   :  { %v609_v11 = vrot.slane %v608_v8, 1 }
 0x3aa   :  { %489 = vmax.xlane.f32.xlu0 %v488_v60 }
 0x3ae   :  { %492 = vmax.xlane.f32.xlu0 %v491_v9 }
 0x3b3   :  { %1302 = vrot.lane.b32.xlu1 %v2392_v10, %s2259_s23 }
 0x3b7   :  { %504 = vperm.xlu1 %2128, %v2328_v46  }
 0x3c4   :  { %499 = vperm.xlu0 %2127, %v2338_v51  }
 0x3d4   :  { %v652_v12 = vpop.trf.xlu1 }
 0x3d5   :  { %2037 = vmatprep.mubr.msk.f32.mxu0 %vm484_vm3, %v652_v12 }
 0x3d8   :  { %v653_v13 = vpop.trf.xlu1 }
 0x3d9   :  { %2038 = vmatmul.mubr.msk.f32.vlgmr.msra.gmra.mxu0 %vm484_vm3, %v653_v13  ;;  %v614_v13 = vrot.slane %v2377_v2, 4 }
 0x3da   :  { %v771_v14 = vpop.trf.xlu0 }
 0x3db   :  { %2044 = vmatprep.mubr.msk.f32.mxu1 %vm484_vm3, %v771_v14 }
 0x3de   :  { %v772_v15 = vpop.trf.xlu0 }
 0x3df   :  { %2045 = vmatmul.mubr.msk.f32.vlgmr.msra.gmra.mxu1 %vm484_vm3, %v772_v15 }
 0x3f5   :  { %v1184_v16 = vpop.permute.xlu1 %1183 }
 0x3f6   :  { %v1196_v17 = vsub.f32 %v2342_v53, %v1184_v16 }
 0x3f8   :  { %v1224_v18 = vsub.f32 %v1196_v17, %v2364_v19 }
 0x3fa   :  { %v1238_v20 = vmul.f32 1.442695, %v1224_v18  ;;  %v610_v18 = vadd.f32 %v609_v11, %v608_v8 }
 0x3fc   :  { %2145 = vpow2.f32 %v1238_v20 }
 0x406   :  { %v1188_v21 = vpop.permute.xlu0 %1187 }
 0x407   :  { %v1197_v23 = vsub.f32 %v2340_v52, %v1188_v21 }
 0x409   :  { %v1225_v24 = vsub.f32 %v1197_v23, %v2364_v19  ;;  %v2146_v30 = vpop.eup %2145 }
 0x40a   :  { %v1248_v33 = vadd.f32 0.0001, %v2146_v30 }
 0x40b   :  { %v1240_v26 = vmul.f32 1.442695, %v1225_v24  ;;  %v615_v24 = vadd.f32 %v614_v13, %v2377_v2 }
 0x40c   :  { %v1259_v35 = vsel %vm1145_vm4, %v1248_v33, 0.0 }
 0x40d   :  { %2147 = vpow2.f32 %v1240_v26  ;;  %v616_v28 = vrot.slane %v615_v24, 2 }
 0x40e   :  { %2149 = vpow2.f32 %v1236_v32 }
 0x41a   :  { %v2148_v34 = vpop.eup %2147 }
 0x41b   :  { %v1249_v53 = vadd.f32 0.0001, %v2148_v34  ;;  %v2150_v37 = vpop.eup %2149 }
 0x41c   :  { %v2412_v39 = vadd.f32 0.0001, %v2150_v37 }
 0x41d   :  { %v1260_v52 = vsel %vm1145_vm4, %v1249_v53, 0.0 }
 0x41e   :  { %v2410_v36 = vadd.f32 %v1260_v52, %v1259_v35 }
 0x427   :  { %v487_v38 = vpop.xlane.xlu1 %486 }
 0x428   :  { %547 = vperm.xlu1 %2128, %v487_v38  }
 0x42b   :  { %v496_v40 = vpop.xlane.xlu1 %495 }
 0x42c   :  { %1304 = vrot.lane.b32.xlu1 %v2412_v39, %s2259_s23 }
 0x42f   :  { %v1303_v50 = vpop.permute.xlu1 %1302 }
 0x433   :  { %v490_v47 = vpop.xlane.xlu0 %489 }
 0x434   :  { %552 = vperm.xlu1 %2128, %v490_v47  }
 0x437   :  { %v493_v19 = vpop.xlane.xlu0 %492 }
 0x438   :  { %509 = vperm.xlu1 %2128, %v2350_v57   ;;  %557 = vperm.xlu0 %2127, %v493_v19  }
 0x43c   :  { %1429 = vrot.lane.b32.xlu1 %v1248_v33, %s2259_s23  ;;  %562 = vperm.xlu0 %2127, %v496_v40  }
 0x43f   :  { %v500_v58 = vpop.permute.xlu0 %499 }
 0x440   :  { %514 = vperm.xlu1 %2128, %v2346_v55   ;;  %1340 = vrot.lane.b32.xlu0 %v2294_v25, %s2260_s24  ;;  %v537_v62 = vsub.f32 %v2322_v43, %v500_v58 }
 0x444   :  { %1431 = vrot.lane.b32.xlu1 %v1249_v53, %s2259_s23  ;;  %1467 = vrot.lane.b32.xlu0 %v2304_v31, %s2260_s24  ;;  %v505_v31 = vpop.permute.xlu1 %504  ;;  %v617_v53 = vadd.f32 %v616_v28, %v615_v24  ;;  %v480_v28 = vld [vmem:[#allocation5 + $0x40] sm:$0xff] }
 0x445   :  { %v538_v7 = vsub.f32 %v2320_v42, %v505_v31 }
 0x446   :  { %v618_v38 = vrot.slane %v617_v53, 1 }
 0x448   :  { %1342 = vrot.lane.b32.xlu1 %v2292_v22, %s2260_s24  ;;  %v619_v40 = vadd.f32 %v618_v38, %v617_v53 }
 0x44c   :  { %1469 = vrot.lane.b32.xlu1 %v2299_v29, %s2260_s24 }
 0x463   :  { %1147 = vmax.xlane.f32.xlu0 %v1146_v41 }
 0x470   :  { %1150 = vmax.xlane.f32.xlu1 %v1149_v48  ;;  %v1155_v48 = vsel %vm1145_vm4, %v2324_v44, -inf }
 0x499   :  { %v2039_v54 = vpop.f32.mrf.mxu0 }
 0x49a   :  { %2047 = vmatprep.subr.mxu1 %v2039_v54 }
 0x49b   :  { %v746_v25 = vpop.f32.mrf.mxu0  ;;  %2048 = vmatpush3.msra.mxu1 %v2039_v54 }
 0x49c   :  { %2049 = vmatprep.subr.mxu1 %v746_v25 }
 0x49d   :  { %2050 = vmatpush3.msra.mxu1 %v746_v25 }
 0x49e   :  { %2061 = vmatprep.subr.mxu1 %v480_v28 }
 0x49f   :  { %v2046_v22 = vpop.f32.mrf.mxu1 }
 0x4a0   :  { %2054 = vmatprep.subr.mxu0 %v2046_v22 }
 0x4a1   :  { %v865_v29 = vpop.f32.mrf.mxu1  ;;  %2055 = vmatpush3.msra.mxu0 %v2046_v22 }
 0x4a2   :  { %2056 = vmatprep.subr.mxu0 %v865_v29 }
 0x4a3   :  { %v548_v63 = vpop.permute.xlu1 %547  ;;  %1308 = vxpose.xlu1.b32.start [1/2] (short) (narrow) %v1303_v50, 16  ;;  %2057 = vmatpush3.msra.mxu0 %v865_v29 }
 0x4a4   :  { %v570_v1 = vsub.f32 %v537_v62, %v548_v63 }
 0x4a6   :  { %v578_v3 = vmul.f32 1.442695, %v570_v1 }
 0x4a7   :  { %v1305_v5 = vpop.permute.xlu1 %1304 }
 0x4a8   :  { %2151 = vpow2.f32 %v578_v3  ;;  %1309 = vxpose.xlu1.b32.end [2/2] (short) (narrow) %v1305_v5, 16  ;;  %v1251_v3 = vsel %vm1145_vm4, %v2412_v39, 0.0  ;;  %v1250_v5 = vsel %vm1145_vm4, %v2392_v10, 0.0 }
 0x4a9   :  { %v1252_v6 = vadd.f32 %v1251_v3, %v1250_v5 }
 0x4ab   :  { %v1253_v8 = vrot.slane %v1252_v6, 4 }
 0x4af   :  { %v553_v60 = vpop.permute.xlu1 %552 }
 0x4b0   :  { %v571_v9 = vsub.f32 %v538_v7, %v553_v60 }
 0x4b2   :  { %v580_v49 = vmul.f32 1.442695, %v571_v9 }
 0x4b3   :  { %v510_v12 = vpop.permute.xlu1 %509  ;;  %v558_v16 = vpop.permute.xlu0 %557 }
 0x4b4   :  { %2153 = vpow2.f32 %v580_v49  ;;  %v539_v14 = vsub.f32 %v2326_v45, %v510_v12  ;;  %v1254_v12 = vadd.f32 %v1253_v8, %v1252_v6 }
 0x4b5   :  { %v2152_v15 = vpop.eup %2151 }
 0x4b6   :  { %v594_v56 = vadd.f32 0.0001, %v2152_v15  ;;  %v572_v17 = vsub.f32 %v539_v14, %v558_v16  ;;  %v1255_v14 = vrot.slane %v1254_v12, 2 }
 0x4b7   :  { %v1430_v20 = vpop.permute.xlu1 %1429  ;;  %v563_v30 = vpop.permute.xlu0 %562 }
 0x4b8   :  { %v582_v21 = vmul.f32 1.442695, %v572_v17  ;;  %1435 = vxpose.xlu0.b32.start [1/2] (short) (narrow) %v1430_v20, 16  ;;  %2051 = vmatprep.mubr.msk.f32.mxu1 %vm484_vm3, %v594_v56  ;;  %v620_v23 = vmul.f32 %v610_v18, %v594_v56  ;;  %v1256_v16 = vadd.f32 %v1255_v14, %v1254_v12 }
 0x4ba   :  { %2155 = vpow2.f32 %v582_v21  ;;  %v624_v63 = vsel %vm484_vm3, %v620_v23, 0.0  ;;  %v1257_v17 = vrot.slane %v1256_v16, 1 }
 0x4bb   :  { %v515_v26 = vpop.permute.xlu1 %514  ;;  %v1341_v31 = vpop.permute.xlu0 %1340 }
 0x4bc   :  { %v540_v27 = vsub.f32 %v2324_v44, %v515_v26 }
 0x4be   :  { %v573_v32 = vsub.f32 %v540_v27, %v563_v30  ;;  %v479_v30 = vld [vmem:[#allocation5 + $0x18] sm:$0xff] }
 0x4bf   :  { %v1432_v33 = vpop.permute.xlu1 %1431  ;;  %v1468_v22 = vpop.permute.xlu0 %1467 }
 0x4c0   :  { %v584_v34 = vmul.f32 1.442695, %v573_v32  ;;  %1436 = vxpose.xlu0.b32.end [2/2] (short) (narrow) %v1432_v33, 16 }
 0x4c1   :  { %v2154_v35 = vpop.eup %2153 }
 0x4c2   :  { %v595_v52 = vadd.f32 0.0001, %v2154_v35  ;;  %2157 = vpow2.f32 %v584_v34 }
 0x4c3   :  { %v1343_v37 = vpop.permute.xlu1 %1342 }
 0x4c4   :  { %2052 = vmatmul.mubr.msk.f32.vlgmr.msra.gmra.mxu1 %vm484_vm3, %v595_v52  ;;  %2071 = vmatprep.subr.mxu0 %v1343_v37  ;;  %v2438_v2 = vmul.f32 %v610_v18, %v595_v52 }
 0x4c5   :  { %2062 = vmatpush3.msra.mxu1 %v480_v28 }
 0x4c6   :  { %2130 = vset.pattern.permute.xlu1 %v2258_v61  ;;  %v627_v27 = vsel %vm484_vm3, %v2438_v2, 0.0  ;;  %2063 = vmatprep.subr.mxu1 %v479_v30 }
 0x4c7   :  { %v2156_v47 = vpop.eup %2155  ;;  %v1470_v58 = vpop.permute.xlu1 %1469  ;;  %2064 = vmatpush3.msra.mxu1 %v479_v30 }
 0x4c8   :  { %v596_v19 = vadd.f32 0.0001, %v2156_v47  ;;  %v1262_v47 = vrot.slane %v2410_v36, 4 }
 0x4ca   :  { %2058 = vmatprep.mubr.msk.f32.mxu0 %vm484_vm3, %v596_v19  ;;  %v622_v41 = vmul.f32 %v619_v40, %v596_v19 }
 0x4cf   :  { %v2158_v50 = vpop.eup %2157  ;;  %1156 = vmax.xlane.f32.xlu1 %v1155_v48  ;;  %v1263_v48 = vadd.f32 %v1262_v47, %v2410_v36 }
 0x4d0   :  { %v597_v54 = vadd.f32 0.0001, %v2158_v50 }
 0x4d2   :  { %2059 = vmatmul.mubr.msk.f32.vlgmr.msra.gmra.mxu0 %vm484_vm3, %v597_v54  ;;  %v623_v25 = vmul.f32 %v619_v40, %v597_v54 }
 0x4d3   :  { %2072 = vmatpush3.msra.mxu0 %v1343_v37 }
 0x4d4   :  { %2073 = vmatprep.subr.mxu0 %v1341_v31 }
 0x4d5   :  { %2074 = vmatpush3.msra.mxu0 %v1341_v31 }
 0x4d6   :  { %2078 = vmatprep.subr.mxu0 %v1470_v58 }
 0x4e0   :  { %1163 = vperm.xlu1 %2130, %v2328_v46  }
 0x4e4   :  { %2131 = vset.pattern.permute.xlu1 %v2255_v0 }
 0x4e9   :  { %2129 = vset.pattern.permute.xlu0 %v2258_v61 }
 0x4ec   :  { %v1148_v29 = vpop.xlane.xlu0 %1147 }
 0x4ed   :  { %1153 = vmax.xlane.f32.xlu0 %v1152_v59  ;;  %1200 = vperm.xlu1 %2131, %v1148_v29  }
 0x4f9   :  { %v1151_v62 = vpop.xlane.xlu1 %1150 }
 0x4fa   :  { %1205 = vperm.xlu1 %2131, %v1151_v62  }
 0x4fe   :  { %2132 = vset.pattern.permute.xlu1 %v2258_v61  ;;  %v630_v61 = vsel %vm484_vm3, %v622_v41, 0.0 }
 0x4ff   :  { %1167 = vperm.xlu1 %2132, %v2350_v57  }
 0x503   :  { %1159 = vperm.xlu0 %2129, %v2338_v51   ;;  %1171 = vperm.xlu1 %2132, %v2346_v55   ;;  %v633_v51 = vsel %vm484_vm3, %v623_v25, 0.0 }
 0x507   :  { %2133 = vset.pattern.permute.xlu1 %v2255_v0  ;;  %2134 = vset.pattern.permute.xlu0 %v2255_v0 }
 0x520   :  { %v1324_v46 = vpop.trf.xlu1 }
 0x521   :  { %2075 = vmatprep.mubr.msk.f32.mxu0 %vm484_vm3, %v1324_v46 }
 0x522   :  { %625 = vadd.xlane.f32.xlu0 %v624_v63 }
 0x524   :  { %v1325_v1 = vpop.trf.xlu1 }
 0x525   :  { %2076 = vmatmul.mubr.msk.f32.vlgmr.msra.gmra.mxu0 %vm484_vm3, %v1325_v1 }
 0x526   :  { %2079 = vmatpush3.msra.mxu0 %v1470_v58  ;;  %631 = vadd.xlane.f32.xlu0 %v630_v61 }
 0x527   :  { %2080 = vmatprep.subr.mxu0 %v1468_v22 }
 0x528   :  { %2081 = vmatpush3.msra.mxu0 %v1468_v22  ;;  %v1264_v22 = vrot.slane %v1263_v48, 2 }
 0x52a   :  { %634 = vadd.xlane.f32.xlu0 %v633_v51  ;;  %v1265_v59 = vadd.f32 %v1264_v22, %v1263_v48 }
 0x538   :  { %v1451_v55 = vpop.trf.xlu0 }
 0x539   :  { %2082 = vmatprep.mubr.msk.f32.mxu0 %vm484_vm3, %v1451_v55 }
 0x53c   :  { %v1452_v0 = vpop.trf.xlu0 }
 0x53d   :  { %2083 = vmatmul.mubr.msk.f32.vlgmr.msra.gmra.mxu0 %vm484_vm3, %v1452_v0 }
 0x558   :  { %v1157_v57 = vpop.xlane.xlu1 %1156 }
 0x55c   :  { %v1164_v4 = vpop.permute.xlu1 %1163 }
 0x55d   :  { %v1191_v60 = vsub.f32 %v2320_v42, %v1164_v4  ;;  %v1258_v42 = vadd.f32 %v1257_v17, %v1256_v16 }
 0x568   :  { %v1201_v7 = vpop.permute.xlu1 %1200 }
 0x575   :  { %v1206_v9 = vpop.permute.xlu1 %1205 }
 0x576   :  { %v1219_v49 = vsub.f32 %v1191_v60, %v1206_v9  ;;  %v1154_v11 = vpop.xlane.xlu0 %1153 }
 0x577   :  { %1210 = vperm.xlu1 %2133, %v1154_v11  }
 0x578   :  { %v1228_v13 = vmul.f32 1.442695, %v1219_v49 }
 0x57a   :  { %2159 = vpow2.f32 %v1228_v13  ;;  %v1168_v38 = vpop.permute.xlu1 %1167 }
 0x57b   :  { %1215 = vperm.xlu1 %2133, %v1157_v57   ;;  %v1192_v19 = vsub.f32 %v2326_v45, %v1168_v38  ;;  %v1266_v45 = vrot.slane %v1265_v59, 1 }
 0x57d   :  { %v1267_v1 = vadd.f32 %v1266_v45, %v1265_v59 }
 0x57e   :  { %v1160_v15 = vpop.permute.xlu0 %1159  ;;  %v1172_v2 = vpop.permute.xlu1 %1171 }
 0x57f   :  { %v1190_v39 = vsub.f32 %v2322_v43, %v1160_v15  ;;  %v1193_v50 = vsub.f32 %v2324_v44, %v1172_v2 }
 0x581   :  { %v1218_v56 = vsub.f32 %v1190_v39, %v1201_v7 }
 0x583   :  { %v1226_v10 = vmul.f32 1.442695, %v1218_v56 }
 0x584   :  { %v2053_v32 = vpop.f32.mrf.mxu1 }
 0x585   :  { %2161 = vpow2.f32 %v1226_v10 }
 0x586   :  { %v946_v34 = vpop.f32.mrf.mxu1 }
 0x587   :  { %v2160_v18 = vpop.eup %2159 }
 0x588   :  { %v1243_v20 = vadd.f32 0.0001, %v2160_v18  ;;  %v482_v18 = vld [vmem:[#allocation5 + $0x90] sm:$0xff] }
 0x58a   :  { %1558 = vrot.lane.b32.xlu0 %v1243_v20, %s2259_s23  ;;  %v1269_v21 = vmul.f32 %v1258_v42, %v1243_v20  ;;  %v481_v20 = vld [vmem:[#allocation5 + $0x68] sm:$0xff] }
 0x592   :  { %v2162_v23 = vpop.eup %2161  ;;  %v2060_v35 = vpop.f32.mrf.mxu0 }
 0x593   :  { %v1242_v24 = vadd.f32 0.0001, %v2162_v23 }
 0x594   :  { %v1027_v52 = vpop.f32.mrf.mxu0 }
 0x595   :  { %v1268_v26 = vmul.f32 %v1258_v42, %v1242_v24 }
 0x597   :  { %1276 = vrot.lane.b32.xlu0 %v1268_v26, %s2259_s23 }
 0x59f   :  { %628 = vadd.xlane.f32.xlu1 %v627_v27 }
 0x5ab   :  { %v626_v43 = vpop.xlane.xlu0 %625 }
 0x5ac   :  { %2163 = vrcp.f32 %v626_v43 }
 0x5af   :  { %v632_v0 = vpop.xlane.xlu0 %631 }
 0x5b0   :  { %1556 = vrot.lane.b32.xlu1 %v1242_v24, %s2259_s23 }
 0x5b3   :  { %v635_v57 = vpop.xlane.xlu0 %634 }
 0x5b9   :  { %v2164_v33 = vpop.eup %2163 }
 0x5ba   :  { %v1040_v53 = vmul.f32 %v2164_v33, %v946_v34 }
 0x5bc   :  { %2065 = vmatprep.mubr.msk.f32.mxu1 %vm484_vm3, %v1040_v53 }
 0x5e5   :  { %v2077_v37 = vpop.f32.mrf.mxu0 }
 0x5e6   :  { %2085 = vmatprep.subr.mxu1 %v2077_v37 }
 0x5e7   :  { %v1418_v29 = vpop.f32.mrf.mxu0 }
 0x5f2   :  { %v1211_v40 = vpop.permute.xlu1 %1210 }
 0x5f3   :  { %v1220_v41 = vsub.f32 %v1192_v19, %v1211_v40  ;;  %v483_v40 = vld [vmem:[#allocation5 + $0x20] ss:$0 sm:$0xff] }
 0x5f5   :  { %v1230_v54 = vmul.f32 1.442695, %v1220_v41 }
 0x5f6   :  { %v1216_v25 = vpop.permute.xlu1 %1215 }
 0x5f7   :  { %2165 = vpow2.f32 %v1230_v54  ;;  %v1221_v31 = vsub.f32 %v1193_v50, %v1216_v25 }
 0x5f9   :  { %v1232_v58 = vmul.f32 1.442695, %v1221_v31 }
 0x5fb   :  { %2167 = vpow2.f32 %v1232_v58 }
 0x5fc   :  { %v1559_v3 = vpop.permute.xlu0 %1558  ;;  %2169 = vrcp.f32 %v632_v0 }
 0x5fd   :  { %v2084_v62 = vpop.f32.mrf.mxu0 }
 0x5fe   :  { %2092 = vmatprep.subr.mxu0 %v2084_v62 }
 0x5ff   :  { %v1545_v46 = vpop.f32.mrf.mxu0  ;;  %2093 = vmatpush3.msra.mxu0 %v2084_v62 }
 0x600   :  { %2094 = vmatprep.subr.mxu0 %v1545_v46 }
 0x601   :  { %2095 = vmatpush3.msra.mxu0 %v1545_v46 }
 0x604   :  { %v2166_v63 = vpop.eup %2165 }
 0x605   :  { %v1244_v36 = vadd.f32 0.0001, %v2166_v63 }
 0x607   :  { %1641 = vrot.lane.b32.xlu1 %v1244_v36, %s2259_s23  ;;  %v1270_v44 = vmul.f32 %v1267_v1, %v1244_v36 }
 0x608   :  { %v2168_v61 = vpop.eup %2167 }
 0x609   :  { %1280 = vrot.lane.b32.xlu0 %v1270_v44, %s2259_s23  ;;  %v1245_v51 = vadd.f32 0.0001, %v2168_v61  ;;  %v1277_v4 = vpop.permute.xlu0 %1276  ;;  %v2170_v7 = vpop.eup %2169 }
 0x60a   :  { %v1288_v5 = vsel %vm484_vm3, %v1277_v4, 0.0  ;;  %v1042_v49 = vmul.f32 %v2170_v7, %v1027_v52 }
 0x60b   :  { %1643 = vrot.lane.b32.xlu1 %v1245_v51, %s2259_s23  ;;  %v1271_v55 = vmul.f32 %v1267_v1, %v1245_v51 }
 0x60f   :  { %1278 = vrot.lane.b32.xlu1 %v1269_v21, %s2259_s23 }
 0x613   :  { %1282 = vrot.lane.b32.xlu1 %v1271_v55, %s2259_s23 }
 0x628   :  { %v629_v6 = vpop.xlane.xlu1 %628  ;;  %1289 = vadd.xlane.f32.xlu0 %v1288_v5 }
 0x629   :  { %2171 = vrcp.f32 %v629_v6 }
 0x62a   :  { %2173 = vrcp.f32 %v635_v57 }
 0x62c   :  { %v1557_v12 = vpop.permute.xlu1 %1556 }
 0x636   :  { %v2172_v8 = vpop.eup %2171 }
 0x637   :  { %v1041_v60 = vmul.f32 %v2172_v8, %v2053_v32  ;;  %v2174_v9 = vpop.eup %2173 }
 0x638   :  { %v1043_v11 = vmul.f32 %v2174_v9, %v2060_v35 }
 0x639   :  { %2066 = vmatmul.mubr.msk.f32.vlgmr.msra.gmra.mxu1 %vm484_vm3, %v1041_v60 }
 0x63a   :  { %2086 = vmatpush3.msra.mxu1 %v2077_v37  ;;  %2068 = vmatprep.mubr.msk.f32.mxu1 %vm484_vm3, %v1042_v49 }
 0x63b   :  { %2087 = vmatprep.subr.mxu1 %v1418_v29 }
 0x63c   :  { %2088 = vmatpush3.msra.mxu1 %v1418_v29 }
 0x63d   :  { %2069 = vmatmul.mubr.msk.f32.gmra.mxu1 %vm484_vm3, %v1043_v11  ;;  %2099 = vmatprep.subr.mxu1 %v482_v18 }
 0x63e   :  { %2089 = vmatprep.mubr.msk.f32.mxu1 %vm484_vm3, %v1557_v12 }
 0x641   :  { %2090 = vmatmul.mubr.msk.f32.vlgmr.msra.gmra.mxu1 %vm484_vm3, %v1559_v3 }
 0x642   :  { %2100 = vmatpush3.msra.mxu1 %v482_v18 }
 0x643   :  { %2101 = vmatprep.subr.mxu1 %v481_v20 }
 0x644   :  { %2102 = vmatpush3.msra.mxu1 %v481_v20 }
 0x679   :  { %v1642_v13 = vpop.permute.xlu1 %1641 }
 0x67a   :  { %2096 = vmatprep.mubr.msk.f32.mxu0 %vm484_vm3, %v1642_v13 }
 0x67b   :  { %v1281_v14 = vpop.permute.xlu0 %1280 }
 0x67c   :  { %v1294_v15 = vsel %vm484_vm3, %v1281_v14, 0.0 }
 0x67d   :  { %v1644_v39 = vpop.permute.xlu1 %1643  ;;  %1295 = vadd.xlane.f32.xlu0 %v1294_v15 }
 0x67e   :  { %2097 = vmatmul.mubr.msk.f32.vlgmr.msra.gmra.mxu0 %vm484_vm3, %v1644_v39 }
 0x681   :  { %v1279_v16 = vpop.permute.xlu1 %1278 }
 0x682   :  { %v1291_v56 = vsel %vm484_vm3, %v1279_v16, 0.0 }
 0x683   :  { %1292 = vadd.xlane.f32.xlu1 %v1291_v56 }
 0x685   :  { %v1283_v10 = vpop.permute.xlu1 %1282 }
 0x686   :  { %v1297_v17 = vsel %vm484_vm3, %v1283_v10, 0.0 }
 0x687   :  { %1298 = vadd.xlane.f32.xlu0 %v1297_v17 }
 0x6b1   :  { %v1290_v42 = vpop.xlane.xlu0 %1289 }
 0x6b2   :  { %2175 = vrcp.f32 %v1290_v42 }
 0x6bf   :  { %v2176_v43 = vpop.eup %2175 }
 0x6f9   :  { %v2067_v21 = vpop.f32.mrf.mxu1 }
 0x6fa   :  { %v1142_v41 = vadd.f32 %v2067_v21, %v483_v40 }
 0x6fb   :  { %v1122_v23 = vpop.f32.mrf.mxu1 }
 0x6fc   :  { %v1141_v50 = vadd.f32 %v1122_v23, %v483_v40 }
 0x6fd   :  { %v2070_v24 = vpop.f32.mrf.mxu1 }
 0x6fe   :  { %v1144_v58 = vadd.f32 %v2070_v24, %v483_v40 }
 0x6ff   :  { %v1132_v26 = vpop.f32.mrf.mxu1 }
 0x700   :  { %v1143_v29 = vadd.f32 %v1132_v26, %v483_v40 }
 0x701   :  { %v2091_v27 = vpop.f32.mrf.mxu1 }
 0x703   :  { %v1630_v28 = vpop.f32.mrf.mxu1 }
 0x704   :  { %v1728_v30 = vmul.f32 %v2176_v43, %v1630_v28 }
 0x706   :  { %2103 = vmatprep.mubr.msk.f32.mxu1 %vm484_vm3, %v1728_v30  ;;  %v1296_v53 = vpop.xlane.xlu0 %1295 }
 0x70c   :  { %v1293_v32 = vpop.xlane.xlu1 %1292 }
 0x70d   :  { %2177 = vrcp.f32 %v1293_v32 }
 0x70e   :  { %2179 = vrcp.f32 %v1296_v53 }
 0x710   :  { %v1299_v35 = vpop.xlane.xlu0 %1298 }
 0x711   :  { %2181 = vrcp.f32 %v1299_v35 }
 0x71a   :  { %v2178_v33 = vpop.eup %2177 }
 0x71b   :  { %v1729_v34 = vmul.f32 %v2178_v33, %v2091_v27  ;;  %v2180_v37 = vpop.eup %2179 }
 0x71d   :  { %2104 = vmatmul.mubr.msk.f32.vlgmr.msra.gmra.mxu1 %vm484_vm3, %v1729_v34 }
 0x71e   :  { %v2182_v2 = vpop.eup %2181 }
 0x73e   :  { %v2098_v52 = vpop.f32.mrf.mxu0 }
 0x73f   :  { %v1731_v19 = vmul.f32 %v2182_v2, %v2098_v52 }
 0x740   :  { %v1715_v38 = vpop.f32.mrf.mxu0 }
 0x741   :  { %v1730_v47 = vmul.f32 %v2180_v37, %v1715_v38 }
 0x743   :  { %2106 = vmatprep.mubr.msk.f32.mxu1 %vm484_vm3, %v1730_v47 }
 0x744   :  { %2107 = vmatmul.mubr.msk.f32.gmra.mxu1 %vm484_vm3, %v1731_v19 }
 0x7dd   :  { %v2105_v48 = vpop.f32.mrf.mxu1 }
 0x7de   :  { %v1830_v54 = vadd.f32 %v2105_v48, %v1142_v41 }
 0x7df   :  { %v1810_v25 = vpop.f32.mrf.mxu1 }
 0x7e0   :  { %1834 = vst.msk [vmem:[#allocation7 + $0x8] sm:$0xff] %vm195_vm2, %v1830_v54  ;;  %v1829_v31 = vadd.f32 %v1810_v25, %v1141_v50 }
 0x7e2   :  { %1833 = vst.msk [vmem:[#allocation7] sm:$0xff] %vm195_vm2, %v1829_v31 }
 0x804   :  { %v2108_v22 = vpop.f32.mrf.mxu1 }
 0x805   :  { %v1832_v59 = vadd.f32 %v2108_v22, %v1144_v58 }
 0x806   :  { %v1820_v62 = vpop.f32.mrf.mxu1 }
 0x807   :  { %1836 = vst.msk [vmem:[#allocation7 + $0x18] sm:$0xff] %vm195_vm2, %v1832_v59  ;;  %v1831_v46 = vadd.f32 %v1820_v62, %v1143_v29 }
 0x809   :  { %1835 = vst.msk [vmem:[#allocation7 + $0x10] sm:$0xff] %vm195_vm2, %v1831_v46 }
 0x80a   :  { %2234 = shalt.err (!%p2231_p0)
}
 0x80b   :  { %1848 = dma.vmem_to_hbm [thread:$0]  %s1843_s26, 512, %s2511_s2, [#allocation4], %s2250_s12, %s2250_s12, %s2251_s13  }
 0x80c   :  { %2247 = dma.done.wait [#allocation4], 512  }
 0x80d   :  { %2248 = vsyncadd [#allocation4], 4294966784 }
 0x80e   :  { %1852 = vsyncpa [#allocation3], 1 }
 0x80f   :  { %1853 = vsyncpa [#allocation6], 1 }
 0x810   :  { %1854 = vsyncpa [#allocation4], 1 }

</bundles_post_ra>
